<compile_context>
chip_gen: v5e
topology: v5e:2x2
jax: 0.10.0
libtpu: 0.0.40
codegen_flags: <defaults>
</compile_context>

<pallas_src>
import functools

import jax
import jax.numpy as jnp
from jax.experimental import pallas as pl
from jax.experimental.pallas import tpu as pltpu


# --------------------------------------------------------------------------- #
# Primary: fused NCHW -> NCHW space-to-depth kernel (no wrapper transposes).
# --------------------------------------------------------------------------- #
def _contract_fused_kernel(x_ref, o_ref, t_ref, *, s, ws, bh):
    """One (batch, channel, row-strip) program.

    x_ref: (bh*s, W)       bh*s consecutive input rows of one channel (NCHW).
    o_ref: (s, s, bh, ws)  the s*s output planes this channel feeds, laid out
                           exactly like the (N, s, s, C, H', W') output view.
    t_ref: (W, bh)         VMEM scratch holding one transposed row-plane.
    """
    for sh in range(s):                              # static unroll, s tiny (2)
        # rows h = h'*s + sh  ->  sublane-strided load (natively supported).
        rows = x_ref[pl.ds(sh, bh, stride=s), :]                 # (bh, W)
        # Put W on the sublane axis so the w = w'*s + sw de-interleave below is
        # also a sublane-strided access (lane-strided loads don't exist on TPU).
        t_ref[...] = jnp.transpose(rows)                         # (W, bh)  XLU
        for sw in range(s):
            seg = t_ref[pl.ds(sw, ws, stride=s), :]              # (ws, bh)
            o_ref[sh, sw] = jnp.transpose(seg)                   # (bh, ws) XLU


def _tpu_vmem_capacity_bytes(default=64 * 1024 * 1024):
    try:
        info = pltpu.get_tpu_info()
        return int(getattr(info, "vmem_capacity_bytes", default))
    except Exception:
        return default


def _pick_strip_rows(hs, s, w, elem, vmem_cap):
    """Output rows (h') per grid step.

    Live VMEM per step ~= double-buffered input strip + double-buffered output
    strip + scratch = (4*s + 1) * bh * W * elem bytes.  Big strips amortize the
    ~0.35 us per-step pipeline overhead (review item), while staying well under
    the scoped-VMEM limit on every generation (incl. v7x's 64 MiB).
    """
    budget = min(int(vmem_cap * 0.45), 40 * 1024 * 1024)
    per_row = (4 * s + 1) * w * elem
    bh = max(1, min(hs, budget // max(per_row, 1)))
    if bh >= 8:
        bh -= bh % 8            # keep strips sublane-aligned
    return bh


def _contract_fused(x_nchw, gain):
    n, c, h, w = x_nchw.shape
    s = gain
    hs, ws = h // s, w // s
    elem = jnp.dtype(x_nchw.dtype).itemsize

    vmem_cap = _tpu_vmem_capacity_bytes()
    bh = _pick_strip_rows(hs, s, w, elem, vmem_cap)
    n_strips = pl.cdiv(hs, bh)
    vmem_limit = int(max(32 * 1024 * 1024,
                         min(vmem_cap * 0.7, 112 * 1024 * 1024)))

    out6 = pl.pallas_call(
        functools.partial(_contract_fused_kernel, s=s, ws=ws, bh=bh),
        out_shape=jax.ShapeDtypeStruct((n, s, s, c, hs, ws), x_nchw.dtype),
        grid=(n, c, n_strips),
        in_specs=[pl.BlockSpec((None, None, bh * s, w),
                               lambda ni, ci, hi: (ni, ci, hi, 0))],
        out_specs=pl.BlockSpec((None, s, s, None, bh, ws),
                               lambda ni, ci, hi: (ni, 0, 0, ci, hi, 0)),
        scratch_shapes=[pltpu.VMEM((w, bh), x_nchw.dtype)],
        compiler_params=pltpu.CompilerParams(
            dimension_semantics=("parallel", "parallel", "parallel"),
            vmem_limit_bytes=vmem_limit),
    )(x_nchw)

    # (N, s, s, C, H', W') -> (N, s*s*C, H', W') is a free leading-dim merge,
    # no transpose / no extra HBM pass.
    return out6.reshape(n, s * s * c, hs, ws)


# --------------------------------------------------------------------------- #
# Fallback: previously-validated NHWC-core kernel (uses wrapper transposes).
# Only used if the fused NCHW kernel fails to lower on this Mosaic build.
# --------------------------------------------------------------------------- #
def _contract_nhwc_kernel(x_ref, o_ref, *, s, c):
    # x_ref: (bh, s, W/s, s*c)   [h', sh, w', sw*c + ch]
    # o_ref: (bh, W/s, s*s*c)    [h', w', sh*s*c + sw*c + ch]
    sc = s * c
    for sh in range(s):
        o_ref[:, :, sh * sc:(sh + 1) * sc] = x_ref[:, sh, :, :]


def _contract_nhwc(x_nchw, gain):
    n, c, h, w = x_nchw.shape
    s = gain
    hs, ws = h // s, w // s
    sc, ssc = s * c, s * s * c

    x5 = jnp.transpose(x_nchw, (0, 2, 3, 1)).reshape(n, hs, s, ws, sc)

    elem = jnp.dtype(x_nchw.dtype).itemsize
    row_bytes = s * ws * sc * elem
    bh = 1
    for d in range(1, hs + 1):
        if hs % d == 0 and d * row_bytes <= (1 << 21):
            bh = d
    n_hb = hs // bh

    out_nhwc = pl.pallas_call(
        functools.partial(_contract_nhwc_kernel, s=s, c=c),
        out_shape=jax.ShapeDtypeStruct((n, hs, ws, ssc), x_nchw.dtype),
        grid=(n, n_hb),
        in_specs=[pl.BlockSpec((None, bh, s, ws, sc),
                               lambda ni, hb: (ni, hb, 0, 0, 0))],
        out_specs=pl.BlockSpec((None, bh, ws, ssc),
                               lambda ni, hb: (ni, hb, 0, 0)),
        compiler_params=pltpu.CompilerParams(
            dimension_semantics=("parallel", "parallel"),
            vmem_limit_bytes=32 * 1024 * 1024),
    )(x5)

    return jnp.transpose(out_nhwc, (0, 3, 1, 2))


# ------------------------------ public entry -------------------------------- #
def contract_pallas(x_nchw, gain=2):
    n, c, h, w = x_nchw.shape
    s = gain
    assert h % s == 0 and w % s == 0, "H and W must be divisible by gain"
    try:
        return _contract_fused(x_nchw, gain)
    except Exception:
        # Guarded fallback (previously validated on TPU); keeps the script
        # running cleanly even if this Mosaic build rejects the fused lowering.
        return _contract_nhwc(x_nchw, gain)


# --------------------------- pure-JAX reference ----------------------------- #
def ref_contract(x, gain=2):
    n, c, h, w = x.shape
    s = gain
    y = x.reshape(n, c, h // s, s, w // s, s)
    y = jnp.transpose(y, (0, 3, 5, 1, 2, 4))
    return y.reshape(n, c * s * s, h // s, w // s)


# ---------------------------------- main ------------------------------------ #
if __name__ == "__main__":
    key = jax.random.PRNGKey(0)
    B, C, H, W = 2, 4, 16, 16
    gain = 2

    x = jax.random.normal(key, (B, C, H, W), jnp.float32)

    out = jax.block_until_ready(contract_pallas(x, gain=gain))
    ref = jax.block_until_ready(ref_contract(x, gain=gain))

    assert out.shape == (B, C * gain * gain, H // gain, W // gain), out.shape
    max_err = float(jnp.max(jnp.abs(out - ref)))
    assert max_err < 1e-6, f"mismatch: max abs err {max_err}"
    print("KERNEL_OK")
</pallas_src>

<mosaic_0001>
module attributes {stable_mosaic.version = 11 : i64} {
  func.func @_contract_fused_kernel(%arg0: i32, %arg1: i32, %arg2: i32, %arg3: memref<1x1x16x16xf32, #tpu.memory_space<vmem>>, %arg4: memref<1x2x2x1x8x8xf32, #tpu.memory_space<vmem>>, %arg5: memref<16x8xf32, #tpu.memory_space<vmem>>) attributes {dimension_semantics = [#tpu.dimension_semantics<parallel>, #tpu.dimension_semantics<parallel>, #tpu.dimension_semantics<parallel>], iteration_bounds = array<i64: 2, 4, 1>, scalar_prefetch = 0 : i64, scratch_operands = 1 : i64, tpu.core_type = #tpu.core_type<tc>, window_params = [{transform_indices = @transform_0, window_bounds = array<i64: 1, 1, 16, 16>}, {transform_indices = @transform_1, window_bounds = array<i64: 1, 2, 2, 1, 8, 8>}]} {
    %c0 = arith.constant 0 : index
    %c0_0 = arith.constant 0 : index
    %c0_1 = arith.constant 0 : index
    %c0_2 = arith.constant 0 : index
    %0 = tpu.strided_load %arg3[%c0, %c0_0, %c0_1, %c0_2] {strides = array<i32: 1, 1, 2, 1>} : memref<1x1x16x16xf32, #tpu.memory_space<vmem>>, vector<1x1x8x16xf32>
    %1 = vector.shape_cast %0 : vector<1x1x8x16xf32> to vector<8x16xf32>
    %2 = tpu.transpose %1, [1, 0] : vector<8x16xf32> -> vector<16x8xf32>
    %c0_3 = arith.constant 0 : index
    %c0_4 = arith.constant 0 : index
    %3 = vector.load %arg5[%c0_3, %c0_4] : memref<16x8xf32, #tpu.memory_space<vmem>>, vector<16x8xf32>
    tpu.vector_store %arg5[%c0_3, %c0_4], %2 {strides = array<i32>} : memref<16x8xf32, #tpu.memory_space<vmem>>, vector<16x8xf32>,
    %c0_5 = arith.constant 0 : index
    %c0_6 = arith.constant 0 : index
    %4 = tpu.strided_load %arg5[%c0_5, %c0_6] {strides = array<i32: 2, 1>} : memref<16x8xf32, #tpu.memory_space<vmem>>, vector<8x8xf32>
    %5 = tpu.transpose %4, [1, 0] : vector<8x8xf32> -> vector<8x8xf32>
    %c0_7 = arith.constant 0 : index
    %c0_8 = arith.constant 0 : index
    %c0_9 = arith.constant 0 : index
    %c0_10 = arith.constant 0 : index
    %c0_11 = arith.constant 0 : index
    %c0_12 = arith.constant 0 : index
    %6 = vector.load %arg4[%c0_7, %c0_8, %c0_9, %c0_10, %c0_11, %c0_12] : memref<1x2x2x1x8x8xf32, #tpu.memory_space<vmem>>, vector<1x1x1x1x8x8xf32>
    %7 = vector.shape_cast %6 : vector<1x1x1x1x8x8xf32> to vector<8x8xf32>
    %8 = vector.shape_cast %5 : vector<8x8xf32> to vector<1x1x1x1x8x8xf32>
    tpu.vector_store %arg4[%c0_7, %c0_8, %c0_9, %c0_10, %c0_11, %c0_12], %8 {strides = array<i32>} : memref<1x2x2x1x8x8xf32, #tpu.memory_space<vmem>>, vector<1x1x1x1x8x8xf32>,
    %c1 = arith.constant 1 : index
    %c0_13 = arith.constant 0 : index
    %9 = tpu.strided_load %arg5[%c1, %c0_13] {strides = array<i32: 2, 1>} : memref<16x8xf32, #tpu.memory_space<vmem>>, vector<8x8xf32>
    %10 = tpu.transpose %9, [1, 0] : vector<8x8xf32> -> vector<8x8xf32>
    %c0_14 = arith.constant 0 : index
    %c0_15 = arith.constant 0 : index
    %c1_16 = arith.constant 1 : index
    %c0_17 = arith.constant 0 : index
    %c0_18 = arith.constant 0 : index
    %c0_19 = arith.constant 0 : index
    %11 = vector.load %arg4[%c0_14, %c0_15, %c1_16, %c0_17, %c0_18, %c0_19] : memref<1x2x2x1x8x8xf32, #tpu.memory_space<vmem>>, vector<1x1x1x1x8x8xf32>
    %12 = vector.shape_cast %11 : vector<1x1x1x1x8x8xf32> to vector<8x8xf32>
    %13 = vector.shape_cast %10 : vector<8x8xf32> to vector<1x1x1x1x8x8xf32>
    tpu.vector_store %arg4[%c0_14, %c0_15, %c1_16, %c0_17, %c0_18, %c0_19], %13 {strides = array<i32>} : memref<1x2x2x1x8x8xf32, #tpu.memory_space<vmem>>, vector<1x1x1x1x8x8xf32>,
    %c0_20 = arith.constant 0 : index
    %c0_21 = arith.constant 0 : index
    %c1_22 = arith.constant 1 : index
    %c0_23 = arith.constant 0 : index
    %14 = tpu.strided_load %arg3[%c0_20, %c0_21, %c1_22, %c0_23] {strides = array<i32: 1, 1, 2, 1>} : memref<1x1x16x16xf32, #tpu.memory_space<vmem>>, vector<1x1x8x16xf32>
    %15 = vector.shape_cast %14 : vector<1x1x8x16xf32> to vector<8x16xf32>
    %16 = tpu.transpose %15, [1, 0] : vector<8x16xf32> -> vector<16x8xf32>
    %c0_24 = arith.constant 0 : index
    %c0_25 = arith.constant 0 : index
    %17 = vector.load %arg5[%c0_24, %c0_25] : memref<16x8xf32, #tpu.memory_space<vmem>>, vector<16x8xf32>
    tpu.vector_store %arg5[%c0_24, %c0_25], %16 {strides = array<i32>} : memref<16x8xf32, #tpu.memory_space<vmem>>, vector<16x8xf32>,
    %c0_26 = arith.constant 0 : index
    %c0_27 = arith.constant 0 : index
    %18 = tpu.strided_load %arg5[%c0_26, %c0_27] {strides = array<i32: 2, 1>} : memref<16x8xf32, #tpu.memory_space<vmem>>, vector<8x8xf32>
    %19 = tpu.transpose %18, [1, 0] : vector<8x8xf32> -> vector<8x8xf32>
    %c0_28 = arith.constant 0 : index
    %c1_29 = arith.constant 1 : index
    %c0_30 = arith.constant 0 : index
    %c0_31 = arith.constant 0 : index
    %c0_32 = arith.constant 0 : index
    %c0_33 = arith.constant 0 : index
    %20 = vector.load %arg4[%c0_28, %c1_29, %c0_30, %c0_31, %c0_32, %c0_33] : memref<1x2x2x1x8x8xf32, #tpu.memory_space<vmem>>, vector<1x1x1x1x8x8xf32>
    %21 = vector.shape_cast %20 : vector<1x1x1x1x8x8xf32> to vector<8x8xf32>
    %22 = vector.shape_cast %19 : vector<8x8xf32> to vector<1x1x1x1x8x8xf32>
    tpu.vector_store %arg4[%c0_28, %c1_29, %c0_30, %c0_31, %c0_32, %c0_33], %22 {strides = array<i32>} : memref<1x2x2x1x8x8xf32, #tpu.memory_space<vmem>>, vector<1x1x1x1x8x8xf32>,
    %c1_34 = arith.constant 1 : index
    %c0_35 = arith.constant 0 : index
    %23 = tpu.strided_load %arg5[%c1_34, %c0_35] {strides = array<i32: 2, 1>} : memref<16x8xf32, #tpu.memory_space<vmem>>, vector<8x8xf32>
    %24 = tpu.transpose %23, [1, 0] : vector<8x8xf32> -> vector<8x8xf32>
    %c0_36 = arith.constant 0 : index
    %c1_37 = arith.constant 1 : index
    %c1_38 = arith.constant 1 : index
    %c0_39 = arith.constant 0 : index
    %c0_40 = arith.constant 0 : index
    %c0_41 = arith.constant 0 : index
    %25 = vector.load %arg4[%c0_36, %c1_37, %c1_38, %c0_39, %c0_40, %c0_41] : memref<1x2x2x1x8x8xf32, #tpu.memory_space<vmem>>, vector<1x1x1x1x8x8xf32>
    %26 = vector.shape_cast %25 : vector<1x1x1x1x8x8xf32> to vector<8x8xf32>
    %27 = vector.shape_cast %24 : vector<8x8xf32> to vector<1x1x1x1x8x8xf32>
    tpu.vector_store %arg4[%c0_36, %c1_37, %c1_38, %c0_39, %c0_40, %c0_41], %27 {strides = array<i32>} : memref<1x2x2x1x8x8xf32, #tpu.memory_space<vmem>>, vector<1x1x1x1x8x8xf32>,
    return
  }
  func.func @transform_0(%arg0: i32, %arg1: i32, %arg2: i32) -> (i32, i32, i32, i32) {
    %c0_i32 = arith.constant 0 : i32
    %c0_i32_0 = arith.constant 0 : i32
    return %arg0, %arg1, %arg2, %c0_i32 : i32, i32, i32, i32
  }
  func.func @transform_1(%arg0: i32, %arg1: i32, %arg2: i32) -> (i32, i32, i32, i32, i32, i32) {
    %c0_i32 = arith.constant 0 : i32
    %c0_i32_0 = arith.constant 0 : i32
    %c0_i32_1 = arith.constant 0 : i32
    %c0_i32_2 = arith.constant 0 : i32
    return %arg0, %c0_i32, %c0_i32_0, %arg1, %arg2, %c0_i32_1 : i32, i32, i32, i32, i32, i32
  }
}

module attributes {stable_mosaic.version = 11 : i64} {
  func.func @_contract_nhwc_kernel(%arg0: i32, %arg1: i32, %arg2: memref<1x8x2x8x8xf32, #tpu.memory_space<vmem>>, %arg3: memref<1x8x8x16xf32, #tpu.memory_space<vmem>>) attributes {dimension_semantics = [#tpu.dimension_semantics<parallel>, #tpu.dimension_semantics<parallel>], iteration_bounds = array<i64: 2, 1>, scalar_prefetch = 0 : i64, scratch_operands = 0 : i64, tpu.core_type = #tpu.core_type<tc>, window_params = [{transform_indices = @transform_0, window_bounds = array<i64: 1, 8, 2, 8, 8>}, {transform_indices = @transform_1, window_bounds = array<i64: 1, 8, 8, 16>}]} {
    %c0 = arith.constant 0 : index
    %c0_0 = arith.constant 0 : index
    %c0_1 = arith.constant 0 : index
    %c0_2 = arith.constant 0 : index
    %c0_3 = arith.constant 0 : index
    %0 = vector.load %arg2[%c0, %c0_0, %c0_1, %c0_2, %c0_3] : memref<1x8x2x8x8xf32, #tpu.memory_space<vmem>>, vector<1x8x1x8x8xf32>
    %1 = vector.shape_cast %0 : vector<1x8x1x8x8xf32> to vector<8x8x8xf32>
    %c0_4 = arith.constant 0 : index
    %c0_5 = arith.constant 0 : index
    %c0_6 = arith.constant 0 : index
    %c0_7 = arith.constant 0 : index
    %2 = vector.load %arg3[%c0_4, %c0_5, %c0_6, %c0_7] : memref<1x8x8x16xf32, #tpu.memory_space<vmem>>, vector<1x8x8x8xf32>
    %3 = vector.shape_cast %2 : vector<1x8x8x8xf32> to vector<8x8x8xf32>
    %4 = vector.shape_cast %1 : vector<8x8x8xf32> to vector<1x8x8x8xf32>
    tpu.vector_store %arg3[%c0_4, %c0_5, %c0_6, %c0_7], %4 {strides = array<i32>} : memref<1x8x8x16xf32, #tpu.memory_space<vmem>>, vector<1x8x8x8xf32>,
    %c0_8 = arith.constant 0 : index
    %c0_9 = arith.constant 0 : index
    %c1 = arith.constant 1 : index
    %c0_10 = arith.constant 0 : index
    %c0_11 = arith.constant 0 : index
    %5 = vector.load %arg2[%c0_8, %c0_9, %c1, %c0_10, %c0_11] : memref<1x8x2x8x8xf32, #tpu.memory_space<vmem>>, vector<1x8x1x8x8xf32>
    %6 = vector.shape_cast %5 : vector<1x8x1x8x8xf32> to vector<8x8x8xf32>
    %c0_12 = arith.constant 0 : index
    %c0_13 = arith.constant 0 : index
    %c0_14 = arith.constant 0 : index
    %c8 = arith.constant 8 : index
    %7 = vector.load %arg3[%c0_12, %c0_13, %c0_14, %c8] : memref<1x8x8x16xf32, #tpu.memory_space<vmem>>, vector<1x8x8x8xf32>
    %8 = vector.shape_cast %7 : vector<1x8x8x8xf32> to vector<8x8x8xf32>
    %9 = vector.shape_cast %6 : vector<8x8x8xf32> to vector<1x8x8x8xf32>
    tpu.vector_store %arg3[%c0_12, %c0_13, %c0_14, %c8], %9 {strides = array<i32>} : memref<1x8x8x16xf32, #tpu.memory_space<vmem>>, vector<1x8x8x8xf32>,
    return
  }
  func.func @transform_0(%arg0: i32, %arg1: i32) -> (i32, i32, i32, i32, i32) {
    %c0_i32 = arith.constant 0 : i32
    %c0_i32_0 = arith.constant 0 : i32
    %c0_i32_1 = arith.constant 0 : i32
    %c0_i32_2 = arith.constant 0 : i32
    return %arg0, %arg1, %c0_i32, %c0_i32_0, %c0_i32_1 : i32, i32, i32, i32, i32
  }
  func.func @transform_1(%arg0: i32, %arg1: i32) -> (i32, i32, i32, i32) {
    %c0_i32 = arith.constant 0 : i32
    %c0_i32_0 = arith.constant 0 : i32
    %c0_i32_1 = arith.constant 0 : i32
    return %arg0, %arg1, %c0_i32, %c0_i32_0 : i32, i32, i32, i32
  }
}

</mosaic_0001>

<bundles_post_ra>
// kernel: tpu_custom_call.1
= control target key start
LH: loop header
LB: loop body
LE: loop exit
PB: predicated region body
PF: predicated region fallthrough
CT: control target
= control target key end

     0   :  { %6 = vsyncpa [#allocation4], 0  ;;  %s894_s0 = inlined_call_operand.hbm [shape: f32[2,4,16,16], index: 0, kind: input, shape index: {}]   ;;  %s895_s1 = inlined_call_operand.hbm [shape: f32[2,2,2,4,8,8], index: 1, kind: output, shape index: {}]  }
   0x1   :  { %8 = vsyncpa [#allocation4 + $0x1], 0 }
   0x2   :  { %9 = vsyncpa [#allocation5], 0 }
   0x3   :  { %11 = vsyncpa [#allocation5 + $0x1], 0  ;;  %s743_s6 = smov 0   ;;  %s745_s7 = smov 0  }
   0x4   :  { %s747_s8 = smov 0   ;;  %s749_s9 = smov 0  }
   0x5   :  { %s751_s10 = smov 0   ;;  %s753_s11 = smov 0  }
   0x6   :  { %s755_s12 = smov 0   ;;  %s757_s13 = smov 0  }
   0x7 LB: > { %s494_s14 = sadd.s32 4294967295, %s726_s13   ;;  %s495_s15 = sadd.s32 4294967294, %s726_s13   ;;  %s726_s13 = sphi %s757_s13, %s17_s13   ;;  %s722_s12 = sphi %s755_s12, %s909_s12   ;;  %s718_s11 = sphi %s753_s11, %s908_s11   ;;  %s714_s10 = sphi %s751_s10, %s907_s10   ;;  %s710_s9 = sphi %s749_s9, %s906_s9   ;;  %s706_s8 = sphi %s747_s8, %s905_s8   ;;  %s702_s7 = sphi %s745_s7, %s904_s7   ;;  %s698_s6 = sphi %s743_s6, %s903_s6  }
   0x8   : > { %s32_s16 = sadd.s32 1, %s718_s11  ;;  %s36_s17 = sadd.s32 1, %s722_s12 }
   0x9   : > { %p34_p0 = scmp.ge.s32.totalorder %s32_s16, 4  ;;  %s47_s18 = sadd.s32 1, %s706_s8 }
   0xa   : > { %p54_p1 = scmp.ne.s32.totalorder %s706_s8, %s702_s7  ;;  %p55_p2 = scmp.eq.s32.totalorder %s726_s13, 0 }
   0xb   : > { %s911_s16 = smov (%p34_p0, %s32_s16), 0  ;;  %s913_s17 = smov (!%p34_p0, %s36_s17), %s722_s12 }
   0xc   : > { %s41_s19 = ssub.s32 %s718_s11, %s911_s16  ;;  %p796_p3 = por %p55_p2, %p54_p1 }
   0xd   : > { %p38_p4 = scmp.ge.s32.totalorder %s913_s17, 2  ;;  %p60_p5 = scmp.ne.s32.totalorder %s702_s7, %s698_s6 }
   0xe   : > { %p61_p6 = scmp.eq.s32.totalorder %s494_s14, 0  ;;  %p88_p7 = scmp.eq.s32.totalorder %s494_s14, 7 }
   0xf   : > { %s915_s17 = smov (%p38_p4, %s913_s17), 0  ;;  %p94_p10 = scmp.eq.s32.totalorder %s495_s15, 7 }
  0x10   : > { %898 = sst [smem:[#allocation9_spill]] %s915_s17  ;;  %p804_p8 = por %p61_p6, %p60_p5 }
  0x11   : > { %p808_p9 = por %p88_p7, %p54_p1  ;;  %s40_s23 = ssub.s32 %s722_s12, %s915_s17 }
  0x12   : > { %s42_s24 = sor.u32 %s41_s19, %s40_s23  ;;  %p814_p12 = por %p94_p10, %p60_p5 }
  0x13   : > { %p45_p11 = scmp.eq.s32.totalorder %s42_s24, 0  ;;  %p526_p13 = scmp.lt.s32.totalorder %s726_s13, 8 }
  0x14   : > { %s114_s26 = sand.u32 1, %s706_s8   ;;  %s499_s29 = sshll.u32 %s718_s11, 1 }
  0x15   : > { %s821_s27 = scalar_select %p45_p11, %s706_s8, %s47_s18  }
  0x16   : > { %s498_s28 = sshll.u32 %s114_s26, 4  ;;  %s500_s30 = sshll.u32 %s722_s12, 3 }
  0x17   : > { %s118_s2 = scalar_lea.vmem [#allocation3], %s498_s28  ;;  %s125_s4 = sadd.s32 %s500_s30, %s499_s29 }
  0x18   : > { %s130_s3 = sshll.u32 %s118_s2, 4  ;;  %s501_s5 = sshll.u32 %s125_s4, 3  ;;  %s131_s3 = int_to_ptr.vmem [resolvable:$true] %s130_s3 }
  0x19   : > { %p519_p0 = pnand %p526_p13, %p796_p3  ;;  %s127_s19 = scalar_lea.hbm %s894_s0, %s501_s5 }
  0x1a   : > { %s128_s23 = sshll.u32 %s127_s19, 4  ;;  %s115_s18 = scalar_lea.sflag [#allocation4], %s114_s26  ;;  %s129_s23 = int_to_ptr.hbm [resolvable:$true] %s128_s23 }
  0x1b   : > { %s728_s24 = smov 128   ;;  %s729_s17 = smov 8  }
  0x1c   : > { %521 = dma.hbm_to_vmem [thread:$0]  (!%p519_p0), %s129_s23, 256, %s131_s3, %s115_s18, %s728_s24, %s728_s24, %s729_s17  }
  0x1d   : > { %p502_p1 = scmp.ge.s32.totalorder %s726_s13, 1  ;;  %p138_p2 = scmp.lt.s32.totalorder %s726_s13, 9 }
  0x1f   : > { %p139_p4 = pnand %p502_p1, %p138_p2 }
  0x20   : > { %s833_s28 = sand.u32 (!%p139_p4), 1, %s702_s7  }
  0x21   : > { %142 = sbr.rel (%p139_p4) target bundleno = 404 (0x194), region = 24  ;;  %s503_s20 = sshll.u32 (!%p139_p4), %s833_s28, 4 }
  0x22   : > { %s145_s29 = scalar_lea.sflag (!%p139_p4), [#allocation4], %s833_s28  ;;  %s148_s30 = scalar_lea.vmem (!%p139_p4), [#allocation3], %s503_s20 }
  0x26   : > { %689 = dma.done.wait (%p804_p8), %s145_s29, 256  }
  0x27   : > { %691 = vsyncadd (%p804_p8), %s145_s29, 4294967040  ;;  %v169_v0 = vld [vmem:[%s148_s30] ss:$2 sm:$0xff]  ;;  %v506_v1 = vld [vmem:[%s148_s30 + $0x1] ss:$2 sm:$0xff]  ;;  %vm202_vm0 = vcmask 64512  }
  0x28   : > { %170 = vxpose.xlu0.b32.start.end [1/1] (short) (narrow) %v169_v0, 16  ;;  %s504_s17 = sshll.u32 %s833_s28, 5  ;;  %s510_s21 = sshll.u32 %s714_s10, 4 }
  0x29   : > { %s393_s26 = sadd.s32 %s710_s9, %s510_s21  ;;  %s167_s2 = scalar_lea.vmem [#allocation6], %s504_s17 }
  0x2a   : > { %s511_s3 = sshll.u32 %s393_s26, 3  ;;  %s396_s15 = sshll.u32 %s167_s2, 4  ;;  %s397_s15 = int_to_ptr.vmem [resolvable:$true] %s396_s15 }
  0x2b   : > { %s395_s14 = scalar_lea.hbm %s895_s1, %s511_s3  ;;  %s382_s9 = scalar_lea.sflag [#allocation5], %s833_s28 }
  0x2c   : > { %s398_s19 = sshll.u32 %s395_s14, 4  ;;  %s648_s20 = scalar_lea.hbm %s895_s1, 256  ;;  %s399_s19 = int_to_ptr.hbm [resolvable:$true] %s398_s19 }
  0x2d   : > { %s642_s10 = sshra.s32 %s399_s19, 4  ;;  %s643_s10 = int_to_ptr.hbm [resolvable:$true] %s642_s10 }
  0x2e   : > { %s644_s23 = scalar_lea.hbm %s643_s10, 32  ;;  %p649_p7 = scmp.lt.s32.totalorder %s643_s10, %s895_s1 }
  0x2f   : > { %p645_p3 = scmp.ne.s32.totalorder %s643_s10, %s644_s23  ;;  %p650_p8 = scmp.lt.s32.totalorder %s648_s20, %s644_s23 }
  0x31   : > { %p646_p5 = pnand %p645_p3, %p808_p9  ;;  %p651_p10 = por %p650_p8, %p649_p7 }
  0x33   : > { %p647_p6 = pneg %p646_p5 }
  0x35   : > { %p652_p11 = pnand %p651_p10, %p647_p6 }
  0x38   : > { %277 = vxpose.xlu0.b32.start.end [1/1] (short) (narrow) %v506_v1, 16 }
  0xcc   : > { %v186_v2 = vpop.trf.xlu0 }
  0xcd   : > { %203 = vst.msk [vmem:[#allocation2] sm:$0xff] %vm202_vm0, %v186_v2 }
  0xd4   : > { %v187_v3 = vpop.trf.xlu0 }
  0xd5   : > { %204 = vst.msk [vmem:[#allocation2 + $0x8] sm:$0xff] %vm202_vm0, %v187_v3 }
  0xdc   : > { %v293_v4 = vpop.trf.xlu0  ;;  %v205_v5 = vld [vmem:[#allocation2] ss:$2 sm:$0xff]  ;;  %v240_v6 = vld [vmem:[#allocation2 + $0x1] ss:$2 sm:$0xff] }
  0xdd   : > { %206 = vxpose.xlu1.b32.start.end [1/1] (short) (narrow) %v205_v5, 8  ;;  %309 = vst.msk [vmem:[#allocation2] sm:$0xff] %vm202_vm0, %v293_v4 }
  0xe4   : > { %v294_v7 = vpop.trf.xlu0 }
  0xe5   : > { %241 = vxpose.xlu1.b32.start.end [1/1] (short) (narrow) %v240_v6, 8  ;;  %310 = vst.msk [vmem:[#allocation2 + $0x8] sm:$0xff] %vm202_vm0, %v294_v7 }
  0xec   : > { %v311_v8 = vld [vmem:[#allocation2] ss:$2 sm:$0xff]  ;;  %v346_v9 = vld [vmem:[#allocation2 + $0x1] ss:$2 sm:$0xff] }
  0xed   : > { %312 = vxpose.xlu2.b32.start.end [1/1] (short) (narrow) %v311_v8, 8 }
  0xf5   : > { %347 = vxpose.xlu2.b32.start.end [1/1] (short) (narrow) %v346_v9, 8 }
 0x181   : > { %v222_v10 = vpop.trf.xlu1 }
 0x182   : > { %238 = vst.msk [vmem:[%s167_s2] sm:$0xff] %vm202_vm0, %v222_v10 }
 0x186   : > { %v328_v11 = vpop.trf.xlu2 }
 0x187   : > { %507 = vst.msk [vmem:[%s167_s2 + $0x10] sm:$0xff] %vm202_vm0, %v328_v11 }
 0x189   : > { %v257_v12 = vpop.trf.xlu1 }
 0x18a   : > { %505 = vst.msk [vmem:[%s167_s2 + $0x8] sm:$0xff] %vm202_vm0, %v257_v12 }
 0x18e   : > { %v363_v13 = vpop.trf.xlu2 }
 0x18f   : > { %508 = vst.msk [vmem:[%s167_s2 + $0x18] sm:$0xff] %vm202_vm0, %v363_v13 }
 0x190   : > { %655 = shalt.err (!%p652_p11)
}
 0x191   : > { %s730_s28 = smov 128   ;;  %s731_s17 = smov 512  }
 0x192   : > { %s732_s21 = smov 8  }
 0x193   : > { %516 = dma.vmem_to_hbm [thread:$0]  (%p808_p9), %s397_s15, 512, %s399_s19, %s382_s9, %s730_s28, %s731_s17, %s732_s21  }
 0x194 PF: > { %p527_p13 = scmp.ge.s32.totalorder %s726_s13, 2  ;;  %s413_s26 = sand.u32 1, %s698_s6  }
 0x195   : > { %s414_s2 = scalar_lea.sflag [#allocation5], %s413_s26 }
 0x196   : > { %p523_p0 = pnand %p527_p13, %p814_p12 }
 0x198   : > { %p524_p1 = pneg %p523_p0 }
 0x19a   : > { %693 = dma.done.wait (%p524_p1), %s414_s2, 512  }
 0x19b   : > { %695 = vsyncadd (%p524_p1), %s414_s2, 4294966784  ;;  %s17_s13 = sadd.s32 1, %s726_s13   ;;  %s902_s22 = sld [smem:[#allocation9_spill]] }
 0x19c   : > { %p14_p2 = scmp.ge.s32.totalorder %s17_s13, 10   ;;  %s903_s6 = smov %s702_s7 }
 0x19d   : > { %s904_s7 = smov %s706_s8  ;;  %s905_s8 = smov %s821_s27 }
 0x19e   : > { %s906_s9 = smov %s718_s11  ;;  %s907_s10 = smov %s722_s12 }
 0x19f   : > { %s908_s11 = smov %s911_s16  ;;  %16 = sbr.rel (!%p14_p2) target bundleno = 7 (0x7), region = 74 }
 0x1a1   : > { %s909_s12 = smov %s902_s22 }
 0x1a4   :  { %420 = vsyncpa [#allocation4], 1 }
 0x1a5   :  { %422 = vsyncpa [#allocation4 + $0x1], 1 }
 0x1a6   :  { %423 = vsyncpa [#allocation5], 1 }
 0x1a7   :  { %425 = vsyncpa [#allocation5 + $0x1], 1 }

// kernel: tpu_custom_call.1
= control target key start
LH: loop header
LB: loop body
LE: loop exit
PB: predicated region body
PF: predicated region fallthrough
CT: control target
= control target key end

     0   :  { %6 = vsyncpa [#allocation3], 0  ;;  %s732_s0 = inlined_call_operand.hbm [shape: f32[2,8,2,8,8], index: 0, kind: input, shape index: {}]   ;;  %s733_s1 = inlined_call_operand.hbm [shape: f32[2,8,8,16], index: 1, kind: output, shape index: {}]  }
   0x1   :  { %8 = vsyncpa [#allocation3 + $0x1], 0 }
   0x2   :  { %9 = vsyncpa [#allocation4], 0 }
   0x3   :  { %11 = vsyncpa [#allocation4 + $0x1], 0  ;;  %s549_s6 = smov 0   ;;  %s551_s7 = smov 0  }
   0x4   :  { %s553_s8 = smov 0   ;;  %s555_s9 = smov 0  }
   0x5   :  { %s557_s10 = smov 0   ;;  %s559_s11 = smov 0  }
   0x6 LB: > { %s330_s12 = sadd.s32 4294967295, %s533_s11   ;;  %s331_s13 = sadd.s32 4294967294, %s533_s11   ;;  %s533_s11 = sphi %s559_s11, %s17_s11   ;;  %s529_s10 = sphi %s557_s10, %s742_s10   ;;  %s525_s9 = sphi %s555_s9, %s741_s9   ;;  %s521_s8 = sphi %s553_s8, %s740_s8   ;;  %s517_s7 = sphi %s551_s7, %s739_s7   ;;  %s513_s6 = sphi %s549_s6, %s738_s6  }
   0x7   : > { %s29_s14 = sadd.s32 1, %s529_s10  ;;  %s38_s15 = sadd.s32 1, %s521_s8 }
   0x8   : > { %p31_p0 = scmp.ge.s32.totalorder %s29_s14, 2  ;;  %p45_p1 = scmp.ne.s32.totalorder %s521_s8, %s517_s7 }
   0x9   : > { %p46_p2 = scmp.eq.s32.totalorder %s533_s11, 0  ;;  %p51_p3 = scmp.ne.s32.totalorder %s517_s7, %s513_s6 }
   0xa   : > { %s744_s14 = smov (%p31_p0, %s29_s14), 0  ;;  %p52_p5 = scmp.eq.s32.totalorder %s330_s12, 0 }
   0xb   : > { %p590_p4 = por %p46_p2, %p45_p1  ;;  %s33_s17 = ssub.s32 %s529_s10, %s744_s14 }
   0xc   : > { %p77_p6 = scmp.eq.s32.totalorder %s330_s12, 1  ;;  %p36_p7 = scmp.eq.s32.totalorder %s33_s17, 0 }
   0xd   : > { %p596_p8 = por %p52_p5, %p51_p3  ;;  %p83_p10 = scmp.eq.s32.totalorder %s331_s13, 1 }
   0xe   : > { %p600_p9 = por %p77_p6, %p45_p1  ;;  %p333_p12 = scmp.ge.s32.totalorder %s533_s11, 2 }
   0xf   : > { %s605_s20 = scalar_select %p36_p7, %s521_s8, %s38_s15  }
  0x10   : > { %p607_p11 = por %p83_p10, %p51_p3  ;;  %p367_p13 = scmp.lt.s32.totalorder %s533_s11, 2 }
  0x11   : > { %s103_s22 = sand.u32 1, %s521_s8   ;;  %s353_s24 = sshll.u32 %s529_s10, 7 }
  0x12   : > { %s334_s23 = sshll.u32 %s103_s22, 7  ;;  %s115_s27 = scalar_lea.hbm %s732_s0, %s353_s24 }
  0x13   : > { %s107_s28 = scalar_lea.vmem [#allocation2], %s334_s23  ;;  %s116_s30 = sshll.u32 %s115_s27, 4  ;;  %s117_s30 = int_to_ptr.hbm [resolvable:$true] %s116_s30 }
  0x14   : > { %s118_s29 = sshll.u32 %s107_s28, 4  ;;  %p360_p0 = pnand %p367_p13, %p590_p4  ;;  %s119_s29 = int_to_ptr.vmem [resolvable:$true] %s118_s29 }
  0x15   : > { %p337_p1 = scmp.ge.s32.totalorder %s533_s11, 1  ;;  %s104_s2 = scalar_lea.sflag [#allocation3], %s103_s22 }
  0x16   : > { %s535_s3 = smov 128   ;;  %s536_s4 = smov 8  }
  0x17   : > { %362 = dma.hbm_to_vmem [thread:$0]  (!%p360_p0), %s117_s30, 2048, %s119_s29, %s104_s2, %s535_s3, %s535_s3, %s536_s4  }
  0x18   : > { %p126_p2 = scmp.lt.s32.totalorder %s533_s11, 3 }
  0x1a   : > { %p127_p3 = pnand %p337_p1, %p126_p2 }
  0x1b   : > { %s623_s5 = sand.u32 (!%p127_p3), 1, %s517_s7  }
  0x1c   : > { %130 = sbr.rel (%p127_p3) target bundleno = 171 (0xab), region = 24  ;;  %s338_s12 = sshll.u32 (!%p127_p3), %s623_s5, 7 }
  0x1d   : > { %s133_s13 = scalar_lea.sflag (!%p127_p3), [#allocation3], %s623_s5  ;;  %s627_s15 = scalar_lea.vmem (!%p127_p3), [#allocation2], %s338_s12 }
  0x21   : > { %504 = dma.done.wait (%p596_p8), %s133_s13, 2048  }
  0x22   : > { %506 = vsyncadd (%p596_p8), %s133_s13, 4294965248  ;;  %v342_v0 = vld [vmem:[%s627_s15 + $0x28] sm:$0xff]  ;;  %s537_s16 = smov 8   ;;  %v343_v3 = vld [vmem:[%s627_s15 + $0x38] sm:$0xff]  ;;  %s339_s17 = sshll.u32 %s623_s5, 6  ;;  %vm166_vm0 = vcmask 64512  }
  0x23   : > { %v340_v1 = vld [vmem:[%s627_s15 + $0x8] sm:$0xff]  ;;  %196 = vrot.lane.b32.xlu1 %v342_v0, %s537_s16  ;;  %v341_v4 = vld [vmem:[%s627_s15 + $0x18] sm:$0xff]  ;;  %v160_v8 = vld [vmem:[%s627_s15 + $0x20] sm:$0xff]  ;;  %s652_s18 = scalar_lea.vmem [#allocation5], %s339_s17  ;;  %vm216_vm1 = vcmask 130112   ;;  %s354_s22 = sshll.u32 %s525_s9, 6 }
  0x24   : > { %192 = vrot.lane.b32.xlu0 %v340_v1, %s537_s16  ;;  %v344_v2 = vld [vmem:[%s627_s15 + $0x48] sm:$0xff]  ;;  %v345_v5 = vld [vmem:[%s627_s15 + $0x58] sm:$0xff]  ;;  %v158_v9 = vld [vmem:[%s627_s15] sm:$0xff]  ;;  %s239_s25 = scalar_lea.hbm %s733_s1, %s354_s22  ;;  %s240_s26 = sshll.u32 %s652_s18, 4  ;;  %s241_s26 = int_to_ptr.vmem [resolvable:$true] %s240_s26 }
  0x25   : > { %200 = vrot.lane.b32.xlu2 %v344_v2, %s537_s16  ;;  %v347_v6 = vld [vmem:[%s627_s15 + $0x78] sm:$0xff]  ;;  %v346_v7 = vld [vmem:[%s627_s15 + $0x68] sm:$0xff]  ;;  %169 = vst.msk [vmem:[%s652_s18 + $0x10] sm:$0xff] %vm166_vm0, %v160_v8  ;;  %s242_s27 = sshll.u32 %s239_s25, 4  ;;  %s226_s9 = scalar_lea.sflag [#allocation4], %s623_s5  ;;  %s243_s27 = int_to_ptr.hbm [resolvable:$true] %s242_s27 }
  0x26   : > { %167 = vst.msk [vmem:[%s652_s18] sm:$0xff] %vm166_vm0, %v158_v9  ;;  %v162_v10 = vld [vmem:[%s627_s15 + $0x40] sm:$0xff]  ;;  %v161_v11 = vld [vmem:[%s627_s15 + $0x30] sm:$0xff]  ;;  %s465_s28 = sshra.s32 %s243_s27, 4  ;;  %s471_s3 = scalar_lea.hbm %s733_s1, 128  ;;  %s466_s28 = int_to_ptr.hbm [resolvable:$true] %s465_s28 }
  0x27   : > { %171 = vst.msk [vmem:[%s652_s18 + $0x20] sm:$0xff] %vm166_vm0, %v162_v10  ;;  %v159_v12 = vld [vmem:[%s627_s15 + $0x10] sm:$0xff]  ;;  %v164_v16 = vld [vmem:[%s627_s15 + $0x60] sm:$0xff]  ;;  %s467_s29 = scalar_lea.hbm %s466_s28, 64  ;;  %p472_p7 = scmp.lt.s32.totalorder %s466_s28, %s733_s1 }
  0x28   : > { %170 = vst.msk [vmem:[%s652_s18 + $0x18] sm:$0xff] %vm166_vm0, %v161_v11  ;;  %v163_v14 = vld [vmem:[%s627_s15 + $0x50] sm:$0xff]  ;;  %p468_p4 = scmp.ne.s32.totalorder %s466_s28, %s467_s29  ;;  %p473_p8 = scmp.lt.s32.totalorder %s471_s3, %s467_s29 }
  0x29   : > { %168 = vst.msk [vmem:[%s652_s18 + $0x8] sm:$0xff] %vm166_vm0, %v159_v12  ;;  %v165_v15 = vld [vmem:[%s627_s15 + $0x70] sm:$0xff] }
  0x2a   : > { %172 = vst.msk [vmem:[%s652_s18 + $0x28] sm:$0xff] %vm166_vm0, %v163_v14  ;;  %p469_p5 = pnand %p468_p4, %p600_p9  ;;  %p474_p10 = por %p473_p8, %p472_p7 }
  0x2b   : > { %198 = vrot.lane.b32.xlu1 %v343_v3, %s537_s16  ;;  %174 = vst.msk [vmem:[%s652_s18 + $0x38] sm:$0xff] %vm166_vm0, %v165_v15 }
  0x2c   : > { %194 = vrot.lane.b32.xlu0 %v341_v4, %s537_s16  ;;  %173 = vst.msk [vmem:[%s652_s18 + $0x30] sm:$0xff] %vm166_vm0, %v164_v16  ;;  %p470_p6 = pneg %p469_p5 }
  0x2d   : > { %202 = vrot.lane.b32.xlu2 %v345_v5, %s537_s16 }
  0x2e   : > { %p475_p13 = pnand %p474_p10, %p470_p6 }
  0x33   : > { %206 = vrot.lane.b32.xlu1 %v347_v6, %s537_s16 }
  0x34   : > { %204 = vrot.lane.b32.xlu0 %v346_v7, %s537_s16 }
  0x7f   : > { %v201_v13 = vpop.permute.xlu2 %200 }
  0x80   : > { %221 = vst.msk [vmem:[%s652_s18 + $0x20] sm:$0xff] %vm216_vm1, %v201_v13 }
  0x87   : > { %v203_v17 = vpop.permute.xlu2 %202 }
  0x88   : > { %222 = vst.msk [vmem:[%s652_s18 + $0x28] sm:$0xff] %vm216_vm1, %v203_v17 }
  0x95   : > { %v197_v18 = vpop.permute.xlu1 %196 }
  0x96   : > { %v193_v19 = vpop.permute.xlu0 %192  ;;  %219 = vst.msk [vmem:[%s652_s18 + $0x10] sm:$0xff] %vm216_vm1, %v197_v18 }
  0x97   : > { %217 = vst.msk [vmem:[%s652_s18] sm:$0xff] %vm216_vm1, %v193_v19 }
  0x9d   : > { %v199_v20 = vpop.permute.xlu1 %198 }
  0x9e   : > { %v195_v21 = vpop.permute.xlu0 %194  ;;  %220 = vst.msk [vmem:[%s652_s18 + $0x18] sm:$0xff] %vm216_vm1, %v199_v20 }
  0x9f   : > { %218 = vst.msk [vmem:[%s652_s18 + $0x8] sm:$0xff] %vm216_vm1, %v195_v21 }
  0xa5   : > { %v207_v22 = vpop.permute.xlu1 %206 }
  0xa6   : > { %v205_v23 = vpop.permute.xlu0 %204  ;;  %224 = vst.msk [vmem:[%s652_s18 + $0x38] sm:$0xff] %vm216_vm1, %v207_v22 }
  0xa7   : > { %223 = vst.msk [vmem:[%s652_s18 + $0x30] sm:$0xff] %vm216_vm1, %v205_v23 }
  0xa8   : > { %478 = shalt.err (!%p475_p13)
}
  0xa9   : > { %s538_s5 = smov 128  }
  0xaa   : > { %357 = dma.vmem_to_hbm [thread:$0]  (%p600_p9), %s241_s26, 1024, %s243_s27, %s226_s9, %s538_s5, %s538_s5, %s537_s16  }
  0xab PF: > { %s257_s13 = sand.u32 1, %s513_s6   ;;  %p364_p0 = pnand %p333_p12, %p607_p11 }
  0xac   : > { %s258_s15 = scalar_lea.sflag [#allocation4], %s257_s13 }
  0xad   : > { %p365_p1 = pneg %p364_p0 }
  0xaf   : > { %508 = dma.done.wait (%p365_p1), %s258_s15, 1024  }
  0xb0   : > { %510 = vsyncadd (%p365_p1), %s258_s15, 4294966272  ;;  %s17_s11 = sadd.s32 1, %s533_s11   ;;  %s738_s6 = smov %s517_s7 }
  0xb1   : > { %p14_p2 = scmp.ge.s32.totalorder %s17_s11, 4   ;;  %s739_s7 = smov %s521_s8 }
  0xb2   : > { %s740_s8 = smov %s605_s20  ;;  %s741_s9 = smov %s529_s10 }
  0xb3   : > { %s742_s10 = smov %s744_s14  ;;  %16 = sbr.rel (!%p14_p2) target bundleno = 6 (0x6), region = 70 }
  0xb8   :  { %264 = vsyncpa [#allocation3], 1 }
  0xb9   :  { %266 = vsyncpa [#allocation3 + $0x1], 1 }
  0xba   :  { %267 = vsyncpa [#allocation4], 1 }
  0xbb   :  { %269 = vsyncpa [#allocation4 + $0x1], 1 }

</bundles_post_ra>
